<compile_context>
chip_gen: v5e
topology: v5e:2x2
jax: 0.10.0
libtpu: 0.0.40
codegen_flags: <defaults>
</compile_context>

<pallas_src>
import functools
import math

import jax
import jax.numpy as jnp
from jax import lax
from jax.experimental import pallas as pl
from jax.experimental.pallas import tpu as pltpu


def _round_up(v, m):
    return -(-v // m) * m


def _fc_kernel(*refs, use_gelu, apply_dropout, threshold, inv_keep):
    # refs = ([bits_ref], x_ref, w_ref, b_ref, o_ref, acc_ref)
    if apply_dropout:
        bits_ref, x_ref, w_ref, b_ref, o_ref, acc_ref = refs
    else:
        x_ref, w_ref, b_ref, o_ref, acc_ref = refs
        bits_ref = None

    k = pl.program_id(2)

    @pl.when(k == 0)
    def _init():
        acc_ref[...] = jnp.zeros_like(acc_ref)

    # x tile: (tm, tk); w tile: (tn, tk) in torch (out, in) layout.
    # Contract the K axes directly (no transpose materialized anywhere).
    acc_ref[...] += lax.dot_general(
        x_ref[...], w_ref[...],
        dimension_numbers=(((1,), (1,)), ((), ())),
        preferred_element_type=jnp.float32,
    )

    @pl.when(k == pl.num_programs(2) - 1)
    def _epilogue():
        y = acc_ref[...] + b_ref[...].astype(jnp.float32)
        if use_gelu:
            # nn.GELU() default = exact erf formulation
            y = 0.5 * y * (1.0 + lax.erf(y * (1.0 / math.sqrt(2.0))))
        if apply_dropout:
            # keep with probability 1 - dropout_r via integer threshold
            keep = bits_ref[...] >= jnp.uint32(threshold)
            y = jnp.where(keep, y * inv_keep, 0.0)
        o_ref[...] = y.astype(o_ref.dtype)


def fc_forward(x, w, b, *, dropout_r=0.8, use_relu=True, training=True,
               seed=0, tm_target=256, tn_target=512, tk_target=512):
    """Pallas equivalent of FC.forward.

    x: (..., in_size)   w: (out_size, in_size) [torch layout]   b: (out_size,)
    `use_relu` keeps the original (misleading) torch name; it enables GELU.
    """
    in_size = x.shape[-1]
    out_size = w.shape[0]
    lead = x.shape[:-1]
    m = math.prod(lead) if lead else 1

    apply_dropout = bool(training) and float(dropout_r) > 0.0
    if apply_dropout and dropout_r >= 1.0:
        raise ValueError("dropout_r must be < 1.0 in training mode")

    x2d = x.reshape(m, in_size)

    # ---- tile sizes: MXU/lane aligned, clipped to (padded) problem size ----
    tm = min(tm_target, _round_up(m, 8))
    tn = min(tn_target, _round_up(out_size, 128))   # lane-dense output tiles
    tk = min(tk_target, _round_up(in_size, 128))

    mp = _round_up(m, tm)
    np_ = _round_up(out_size, tn)
    kp = _round_up(in_size, tk)

    # ---- zero-pad to tile multiples only when necessary ----
    if (mp, kp) != (m, in_size):
        x2d = jnp.pad(x2d, ((0, mp - m), (0, kp - in_size)))
    w_p = w
    if (np_, kp) != (out_size, in_size):
        w_p = jnp.pad(w, ((0, np_ - out_size), (0, kp - in_size)))
    b_p = b if np_ == out_size else jnp.pad(b, (0, np_ - out_size))
    b2d = b_p.reshape(1, np_)

    grid = (mp // tm, np_ // tn, kp // tk)

    threshold = 0
    inv_keep = 1.0
    in_specs = []
    args = []
    if apply_dropout:
        threshold = min(int(round(float(dropout_r) * (2 ** 32))), 2 ** 32 - 1)
        inv_keep = 1.0 / (1.0 - float(dropout_r))
        bits = jax.random.bits(jax.random.PRNGKey(seed), (mp, np_),
                               dtype=jnp.uint32)
        in_specs.append(pl.BlockSpec((tm, tn), lambda i, j, k: (i, j)))
        args.append(bits)

    in_specs += [
        pl.BlockSpec((tm, tk), lambda i, j, k: (i, k)),   # x
        pl.BlockSpec((tn, tk), lambda i, j, k: (j, k)),   # W (out, in)
        pl.BlockSpec((1, tn), lambda i, j, k: (0, j)),    # bias
    ]
    args += [x2d, w_p, b2d]

    kernel = functools.partial(
        _fc_kernel,
        use_gelu=bool(use_relu),
        apply_dropout=apply_dropout,
        threshold=threshold,
        inv_keep=inv_keep,
    )

    out2d = pl.pallas_call(
        kernel,
        out_shape=jax.ShapeDtypeStruct((mp, np_), x.dtype),
        grid=grid,
        in_specs=in_specs,
        out_specs=pl.BlockSpec((tm, tn), lambda i, j, k: (i, j)),
        scratch_shapes=[pltpu.VMEM((tm, tn), jnp.float32)],
        compiler_params=pltpu.CompilerParams(
            dimension_semantics=("parallel", "parallel", "arbitrary")),
    )(*args)

    if (mp, np_) != (m, out_size):
        out2d = out2d[:m, :out_size]
    return out2d.reshape(*lead, out_size)


if __name__ == "__main__":
    # Small deterministic setup consistent with FC(in_size, out_size)
    B, S, IN, OUT = 2, 8, 32, 64
    key = jax.random.PRNGKey(0)
    kx, kw, kb = jax.random.split(key, 3)

    x = jax.random.normal(kx, (B, S, IN), dtype=jnp.float32)
    # nn.Linear default init: U(-1/sqrt(in), 1/sqrt(in)) for both W and b
    bound = 1.0 / math.sqrt(IN)
    w = jax.random.uniform(kw, (OUT, IN), minval=-bound, maxval=bound,
                           dtype=jnp.float32)
    b = jax.random.uniform(kb, (OUT,), minval=-bound, maxval=bound,
                           dtype=jnp.float32)

    # Training-mode run (linear -> GELU -> dropout)
    out_train = fc_forward(x, w, b, dropout_r=0.8, use_relu=True,
                           training=True, seed=1234)
    jax.block_until_ready(out_train)
    assert out_train.shape == (B, S, OUT)
    assert bool(jnp.all(jnp.isfinite(out_train)))
    drop_frac = float(jnp.mean(out_train == 0.0))
    assert 0.65 < drop_frac < 0.95, f"unexpected dropout fraction {drop_frac}"

    # Deterministic part (dropout off) checked against a pure-JAX reference
    ref = jax.nn.gelu(x @ w.T + b, approximate=False)
    got = fc_forward(x, w, b, dropout_r=0.8, use_relu=True, training=False)
    jax.block_until_ready(got)
    assert jnp.allclose(got, ref, atol=1e-5, rtol=1e-5), "mismatch vs reference"

    print("KERNEL_OK")
</pallas_src>

<mosaic_0001>
module attributes {stable_mosaic.version = 11 : i64} {
  func.func @_fc_kernel(%arg0: i32, %arg1: i32, %arg2: i32, %arg3: memref<16x128xi32, #tpu.memory_space<vmem>>, %arg4: memref<16x128xf32, #tpu.memory_space<vmem>>, %arg5: memref<128x128xf32, #tpu.memory_space<vmem>>, %arg6: memref<1x128xf32, #tpu.memory_space<vmem>>, %arg7: memref<16x128xf32, #tpu.memory_space<vmem>>, %arg8: memref<16x128xf32, #tpu.memory_space<vmem>>) attributes {dimension_semantics = [#tpu.dimension_semantics<parallel>, #tpu.dimension_semantics<parallel>, #tpu.dimension_semantics<arbitrary>], iteration_bounds = array<i64: 1, 1, 1>, scalar_prefetch = 0 : i64, scratch_operands = 1 : i64, tpu.core_type = #tpu.core_type<tc>, window_params = [{transform_indices = @transform_0, window_bounds = array<i64: 16, 128>}, {transform_indices = @transform_1, window_bounds = array<i64: 16, 128>}, {transform_indices = @transform_2, window_bounds = array<i64: 128, 128>}, {transform_indices = @transform_3, window_bounds = array<i64: 1, 128>}, {transform_indices = @transform_4, window_bounds = array<i64: 16, 128>}]} {
    %c0_i32 = arith.constant 0 : i32
    %0 = arith.cmpi eq, %arg2, %c0_i32 : i32
    %1 = arith.extui %0 : i1 to i32
    %c0_i32_0 = arith.constant 0 : i32
    %2 = arith.cmpi ne, %1, %c0_i32_0 : i32
    scf.if %2 {
      %cst_10 = arith.constant 0.000000e+00 : f32
      %12 = vector.broadcast %cst_10 : f32 to vector<16x128xf32>
      %c0_11 = arith.constant 0 : index
      %c0_12 = arith.constant 0 : index
      %13 = vector.load %arg8[%c0_11, %c0_12] : memref<16x128xf32, #tpu.memory_space<vmem>>, vector<16x128xf32>
      tpu.vector_store %arg8[%c0_11, %c0_12], %12 {strides = array<i32>} : memref<16x128xf32, #tpu.memory_space<vmem>>, vector<16x128xf32>,
    } else {
    }
    %c0 = arith.constant 0 : index
    %c0_1 = arith.constant 0 : index
    %3 = vector.load %arg8[%c0, %c0_1] : memref<16x128xf32, #tpu.memory_space<vmem>>, vector<16x128xf32>
    %c0_2 = arith.constant 0 : index
    %c0_3 = arith.constant 0 : index
    %4 = vector.load %arg4[%c0_2, %c0_3] : memref<16x128xf32, #tpu.memory_space<vmem>>, vector<16x128xf32>
    %c0_4 = arith.constant 0 : index
    %c0_5 = arith.constant 0 : index
    %5 = vector.load %arg5[%c0_4, %c0_5] : memref<128x128xf32, #tpu.memory_space<vmem>>, vector<128x128xf32>
    %cst = arith.constant dense<0.000000e+00> : vector<16x128xf32>
    %6 = tpu.matmul %4, %5, %cst {dimension_numbers = #tpu.dot_dimension_numbers<[1], [1], [0], [0], [0, 0, 1, 0], [], []>} : vector<16x128xf32>, vector<128x128xf32>, vector<16x128xf32> -> vector<16x128xf32>
    %7 = arith.addf %3, %6 : vector<16x128xf32>
    %c0_6 = arith.constant 0 : index
    %c0_7 = arith.constant 0 : index
    %8 = vector.load %arg8[%c0_6, %c0_7] : memref<16x128xf32, #tpu.memory_space<vmem>>, vector<16x128xf32>
    tpu.vector_store %arg8[%c0_6, %c0_7], %7 {strides = array<i32>} : memref<16x128xf32, #tpu.memory_space<vmem>>, vector<16x128xf32>,
    %c0_i32_8 = arith.constant 0 : i32
    %9 = arith.cmpi eq, %arg2, %c0_i32_8 : i32
    %10 = arith.extui %9 : i1 to i32
    %c0_i32_9 = arith.constant 0 : i32
    %11 = arith.cmpi ne, %10, %c0_i32_9 : i32
    scf.if %11 {
      %c0_10 = arith.constant 0 : index
      %c0_11 = arith.constant 0 : index
      %12 = vector.load %arg8[%c0_10, %c0_11] : memref<16x128xf32, #tpu.memory_space<vmem>>, vector<16x128xf32>
      %c0_12 = arith.constant 0 : index
      %c0_13 = arith.constant 0 : index
      %13 = vector.load %arg6[%c0_12, %c0_13] : memref<1x128xf32, #tpu.memory_space<vmem>>, vector<1x128xf32>
      %14 = vector.broadcast %13 : vector<1x128xf32> to vector<16x128xf32>
      %15 = arith.addf %12, %14 : vector<16x128xf32>
      %cst_14 = arith.constant 5.000000e-01 : f32
      %16 = vector.broadcast %cst_14 : f32 to vector<16x128xf32>
      %17 = arith.mulf %16, %15 : vector<16x128xf32>
      %cst_15 = arith.constant 0.707106769 : f32
      %18 = vector.broadcast %cst_15 : f32 to vector<16x128xf32>
      %19 = arith.mulf %15, %18 : vector<16x128xf32>
      %20 = math.erf %19 : vector<16x128xf32>
      %cst_16 = arith.constant 1.000000e+00 : f32
      %21 = vector.broadcast %cst_16 : f32 to vector<16x128xf32>
      %22 = arith.addf %21, %20 : vector<16x128xf32>
      %23 = arith.mulf %17, %22 : vector<16x128xf32>
      %c0_17 = arith.constant 0 : index
      %c0_18 = arith.constant 0 : index
      %24 = vector.load %arg3[%c0_17, %c0_18] : memref<16x128xi32, #tpu.memory_space<vmem>>, vector<16x128xi32>
      %c-858993459_i32 = arith.constant -858993459 : i32
      %25 = vector.broadcast %c-858993459_i32 : i32 to vector<16x128xi32>
      %26 = arith.cmpi uge, %24, %25 : vector<16x128xi32>
      %cst_19 = arith.constant 5.000000e+00 : f32
      %27 = vector.broadcast %cst_19 : f32 to vector<16x128xf32>
      %28 = arith.mulf %23, %27 : vector<16x128xf32>
      %cst_20 = arith.constant 0.000000e+00 : f32
      %29 = vector.broadcast %cst_20 : f32 to vector<16x128xf32>
      %30 = arith.select %26, %28, %29 : vector<16x128xi1>, vector<16x128xf32>
      %c0_21 = arith.constant 0 : index
      %c0_22 = arith.constant 0 : index
      %31 = vector.load %arg7[%c0_21, %c0_22] : memref<16x128xf32, #tpu.memory_space<vmem>>, vector<16x128xf32>
      tpu.vector_store %arg7[%c0_21, %c0_22], %30 {strides = array<i32>} : memref<16x128xf32, #tpu.memory_space<vmem>>, vector<16x128xf32>,
    } else {
    }
    return
  }
  func.func @transform_0(%arg0: i32, %arg1: i32, %arg2: i32) -> (i32, i32) {
    %c0_i32 = arith.constant 0 : i32
    return %arg0, %arg1 : i32, i32
  }
  func.func @transform_1(%arg0: i32, %arg1: i32, %arg2: i32) -> (i32, i32) {
    %c0_i32 = arith.constant 0 : i32
    return %arg0, %arg2 : i32, i32
  }
  func.func @transform_2(%arg0: i32, %arg1: i32, %arg2: i32) -> (i32, i32) {
    %c0_i32 = arith.constant 0 : i32
    return %arg1, %arg2 : i32, i32
  }
  func.func @transform_3(%arg0: i32, %arg1: i32, %arg2: i32) -> (i32, i32) {
    %c0_i32 = arith.constant 0 : i32
    %c0_i32_0 = arith.constant 0 : i32
    return %c0_i32, %arg1 : i32, i32
  }
  func.func @transform_4(%arg0: i32, %arg1: i32, %arg2: i32) -> (i32, i32) {
    %c0_i32 = arith.constant 0 : i32
    return %arg0, %arg1 : i32, i32
  }
}

</mosaic_0001>

<bundles_post_ra>
// kernel: tpu_custom_call.1
= control target key start
LH: loop header
LB: loop body
LE: loop exit
PB: predicated region body
PF: predicated region fallthrough
CT: control target
= control target key end

     0   :  { %9 = vsyncpa [#allocation4], 0  ;;  %s460_s0 = inlined_call_operand.hbm [shape: u32[16,128], index: 0, kind: input, shape index: {}]   ;;  %s461_s1 = inlined_call_operand.hbm [shape: f32[16,128], index: 1, kind: input, shape index: {}]   ;;  %s462_s2 = inlined_call_operand.hbm [shape: f32[128,128], index: 2, kind: input, shape index: {}]   ;;  %s463_s3 = inlined_call_operand.vmem [shape: f32[1,128], index: 3, kind: input, shape index: {}]   ;;  %s464_s4 = inlined_call_operand.hbm [shape: f32[16,128], index: 4, kind: output, shape index: {}]  }
   0x1   :  { %10 = vsyncpa [#allocation7], 0 }
   0x2   :  { %11 = vsyncpa [#allocation5], 0  ;;  %s29_s17 = sshll.u32 %s461_s1, 4  ;;  %s384_s18 = smov [#allocation6]   ;;  %s30_s17 = int_to_ptr.hbm [resolvable:$true] %s29_s17 }
   0x3   :  { %s31_s19 = sshll.u32 %s384_s18, 4  ;;  %s16_s22 = sshll.u32 %s460_s0, 4  ;;  %s32_s19 = int_to_ptr.vmem [resolvable:$true] %s31_s19  ;;  %s17_s22 = int_to_ptr.hbm [resolvable:$true] %s16_s22 }
   0x4   :  { %s385_s23 = smov 128   ;;  %s386_s24 = smov 8  }
   0x5   :  { %37 = dma.hbm_to_vmem [thread:$0]  %s30_s17, 256, %s32_s19, [#allocation7], %s385_s23, %s385_s23, %s386_s24  }
   0x6   :  { %s387_s25 = smov [#allocation3]   ;;  %s42_s1 = sshll.u32 %s462_s2, 4  ;;  %s43_s1 = int_to_ptr.hbm [resolvable:$true] %s42_s1 }
   0x7   :  { %s18_s26 = sshll.u32 %s387_s25, 4  ;;  %s388_s0 = smov [#allocation8]   ;;  %s19_s26 = int_to_ptr.vmem [resolvable:$true] %s18_s26 }
   0x8   :  { %24 = dma.hbm_to_vmem [thread:$0]  %s17_s22, 256, %s19_s26, [#allocation4], %s385_s23, %s385_s23, %s386_s24  }
   0x9   :  { %s44_s29 = sshll.u32 %s388_s0, 4  ;;  %s45_s29 = int_to_ptr.vmem [resolvable:$true] %s44_s29 }
   0xa   :  { %50 = dma.hbm_to_vmem [thread:$0]  %s43_s1, 2048, %s45_s29, [#allocation7], %s385_s23, %s385_s23, %s386_s24  }
   0xb   :  { %378 = dma.done.wait [#allocation4], 256  }
   0xc   :  { %379 = vsyncadd [#allocation4], 4294967040 }
   0xd   :  { %380 = dma.done.wait [#allocation7], 2304  }
   0xe   :  { %381 = vsyncadd [#allocation7], 4294964992  ;;  %v90_v0 = vld [vmem:[#allocation8 + $0x78] sm:$0xff]  ;;  %v89_v1 = vld [vmem:[#allocation8 + $0x70] sm:$0xff]  ;;  %s237_s8 = sshll.u32 %s464_s4, 4  ;;  %s238_s8 = int_to_ptr.hbm [resolvable:$true] %s237_s8 }
   0xf   :  { %91 = vmatpush.xpose.msra.mxu0 %v90_v0  ;;  %255 = vmatpush.xpose.msra.mxu1 %v90_v0  ;;  %v88_v2 = vld [vmem:[#allocation8 + $0x68] sm:$0xff]  ;;  %v87_v3 = vld [vmem:[#allocation8 + $0x60] sm:$0xff]  ;;  %v86_v4 = vld [vmem:[#allocation8 + $0x58] sm:$0xff] }
  0x10   :  { %v85_v5 = vld [vmem:[#allocation8 + $0x50] sm:$0xff]  ;;  %v84_v6 = vld [vmem:[#allocation8 + $0x48] sm:$0xff]  ;;  %v83_v7 = vld [vmem:[#allocation8 + $0x40] sm:$0xff] }
  0x11   :  { %v82_v8 = vld [vmem:[#allocation8 + $0x38] sm:$0xff]  ;;  %v81_v9 = vld [vmem:[#allocation8 + $0x30] sm:$0xff]  ;;  %v80_v10 = vld [vmem:[#allocation8 + $0x28] sm:$0xff] }
  0x12   :  { %v79_v11 = vld [vmem:[#allocation8 + $0x20] sm:$0xff]  ;;  %v78_v12 = vld [vmem:[#allocation8 + $0x18] sm:$0xff]  ;;  %v77_v13 = vld [vmem:[#allocation8 + $0x10] sm:$0xff] }
  0x13   :  { %92 = vmatpush.xpose.msra.mxu0 %v89_v1  ;;  %256 = vmatpush.xpose.msra.mxu1 %v89_v1  ;;  %v76_v14 = vld [vmem:[#allocation8 + $0x8] sm:$0xff]  ;;  %v75_v15 = vld [vmem:[#allocation8] sm:$0xff]  ;;  %v73_v16 = vld [vmem:[#allocation6] sm:$0xff] }
  0x14   :  { %v74_v17 = vld [vmem:[#allocation6 + $0x8] sm:$0xff]  ;;  %v277_v18 = vld [vmem:[%s463_s3] ss:$0 sm:$0xff]  ;;  %s389_s3 = smov [#allocation9]  }
  0x15   :  { %s235_s5 = sshll.u32 %s389_s3, 4  ;;  %s236_s5 = int_to_ptr.vmem [resolvable:$true] %s235_s5 }
  0x17   :  { %93 = vmatpush.xpose.msra.mxu0 %v88_v2  ;;  %257 = vmatpush.xpose.msra.mxu1 %v88_v2 }
  0x1b   :  { %94 = vmatpush.xpose.msra.mxu0 %v87_v3  ;;  %258 = vmatpush.xpose.msra.mxu1 %v87_v3 }
  0x1f   :  { %95 = vmatpush.xpose.msra.mxu0 %v86_v4  ;;  %259 = vmatpush.xpose.msra.mxu1 %v86_v4 }
  0x23   :  { %96 = vmatpush.xpose.msra.mxu0 %v85_v5  ;;  %260 = vmatpush.xpose.msra.mxu1 %v85_v5 }
  0x27   :  { %97 = vmatpush.xpose.msra.mxu0 %v84_v6  ;;  %261 = vmatpush.xpose.msra.mxu1 %v84_v6 }
  0x2b   :  { %98 = vmatpush.xpose.msra.mxu0 %v83_v7  ;;  %262 = vmatpush.xpose.msra.mxu1 %v83_v7 }
  0x2f   :  { %99 = vmatpush.xpose.msra.mxu0 %v82_v8  ;;  %263 = vmatpush.xpose.msra.mxu1 %v82_v8 }
  0x33   :  { %100 = vmatpush.xpose.msra.mxu0 %v81_v9  ;;  %264 = vmatpush.xpose.msra.mxu1 %v81_v9 }
  0x37   :  { %101 = vmatpush.xpose.msra.mxu0 %v80_v10  ;;  %265 = vmatpush.xpose.msra.mxu1 %v80_v10 }
  0x3b   :  { %102 = vmatpush.xpose.msra.mxu0 %v79_v11  ;;  %266 = vmatpush.xpose.msra.mxu1 %v79_v11 }
  0x3f   :  { %103 = vmatpush.xpose.msra.mxu0 %v78_v12  ;;  %267 = vmatpush.xpose.msra.mxu1 %v78_v12 }
  0x43   :  { %104 = vmatpush.xpose.msra.mxu0 %v77_v13  ;;  %268 = vmatpush.xpose.msra.mxu1 %v77_v13 }
  0x47   :  { %105 = vmatpush.xpose.msra.mxu0 %v76_v14  ;;  %269 = vmatpush.xpose.msra.mxu1 %v76_v14 }
  0x4b   :  { %106 = vmatpush.xpose.msra.mxu0 %v75_v15  ;;  %270 = vmatpush.xpose.msra.mxu1 %v75_v15 }
  0x4e   :  { %107 = vmatmul.f32.vlgmr.msra.gmra.mxu0 %v73_v16  ;;  %110 = vmatmul.f32.vlgmr.msra.gmra.mxu1 %v74_v17 }
  0xcb   :  { %v108_v19 = vpop.f32.mrf.mxu0  ;;  %v111_v20 = vpop.f32.mrf.mxu1 }
  0xcc   :  { %v436_v21 = vadd.f32 %v277_v18, %v108_v19  ;;  %v438_v22 = vadd.f32 %v277_v18, %v111_v20 }
  0xce   :  { %v441_v23 = vmul.f32 0.70710677, %v436_v21  ;;  %v444_v24 = vmul.f32 0.70710677, %v438_v22 }
  0xd0   :  { %v133_v25 = vmul.f32 %v441_v23, %v441_v23  ;;  %v173_v26 = vmul.f32 %v444_v24, %v444_v24 }
  0xd2   :  { %v134_v27 = vmin.f32 %v133_v25, 16.0  ;;  %v174_v28 = vmin.f32 %v173_v26, 16.0 }
  0xd4   :  { %v135_v29 = vmul.f32 2.1237322e-06, %v134_v27  ;;  %v146_v30 = vmul.f32 3.8918573e-05, %v134_v27  ;;  %v175_v31 = vmul.f32 2.1237322e-06, %v174_v28 }
  0xd5   :  { %v186_v32 = vmul.f32 3.8918573e-05, %v174_v28 }
  0xd6   :  { %v136_v33 = vadd.f32 0.00028619796, %v135_v29  ;;  %v147_v34 = vadd.f32 0.001143296, %v146_v30  ;;  %v176_v35 = vadd.f32 0.00028619796, %v175_v31 }
  0xd7   :  { %v187_v36 = vadd.f32 0.001143296, %v186_v32  ;;  %v217_v32 = vld [vmem:[#allocation3] sm:$0xff] }
  0xd8   :  { %v137_v37 = vmul.f32 %v136_v33, %v134_v27  ;;  %v148_v38 = vmul.f32 %v147_v34, %v134_v27  ;;  %v177_v39 = vmul.f32 %v176_v35, %v174_v28  ;;  %v218_v34 = vld [vmem:[#allocation3 + $0x8] sm:$0xff] }
  0xd9   :  { %v188_v40 = vmul.f32 %v187_v36, %v174_v28 }
  0xda   :  { %v138_v41 = vadd.f32 0.0036580483, %v137_v37  ;;  %v149_v42 = vadd.f32 0.014752088, %v148_v38  ;;  %v178_v45 = vadd.f32 0.0036580483, %v177_v39 }
  0xdb   :  { %v189_v43 = vadd.f32 0.014752088, %v188_v40  ;;  %v253_v37 = vxor.u32 2147483648, %v217_v32  ;;  %v129_v38 = vmul.f32 0.5, %v436_v21  ;;  %v254_v39 = vxor.u32 2147483648, %v218_v34 }
  0xdc   :  { %v150_v44 = vmul.f32 %v149_v42, %v134_v27  ;;  %v139_v47 = vmul.f32 %v138_v41, %v134_v27  ;;  %v179_v51 = vmul.f32 %v178_v45, %v174_v28  ;;  %v130_v40 = vmul.f32 0.5, %v438_v22 }
  0xdd   :  { %v190_v46 = vmul.f32 %v189_v43, %v174_v28  ;;  %vm221_vm8 = vcmp.ge.s32.totalorder %v253_v37, 1288490189  ;;  %vm224_vm9 = vcmp.ge.s32.totalorder %v254_v39, 1288490189 }
  0xde   :  { %v151_v48 = vadd.f32 0.112945676, %v150_v44  ;;  %v140_v53 = vadd.f32 0.05243302, %v139_v47  ;;  %v180_v57 = vadd.f32 0.05243302, %v179_v51 }
  0xdf   :  { %v191_v49 = vadd.f32 0.112945676, %v190_v46 }
  0xe0   :  { %v152_v50 = vmul.f32 %v151_v48, %v134_v27  ;;  %v141_v59 = vmul.f32 %v140_v53, %v134_v27  ;;  %v181_v62 = vmul.f32 %v180_v57, %v174_v28 }
  0xe1   :  { %v192_v52 = vmul.f32 %v191_v49, %v174_v28 }
  0xe2   :  { %v153_v54 = vadd.f32 0.4994258, %v152_v50  ;;  %v142_v63 = vadd.f32 0.18741608, %v141_v59  ;;  %v182_v0 = vadd.f32 0.18741608, %v181_v62 }
  0xe3   :  { %v193_v55 = vadd.f32 0.4994258, %v192_v52 }
  0xe4   :  { %v154_v56 = vmul.f32 %v153_v54, %v134_v27  ;;  %v143_v2 = vmul.f32 %v142_v63, %v134_v27  ;;  %v183_v5 = vmul.f32 %v182_v0, %v174_v28 }
  0xe5   :  { %v194_v58 = vmul.f32 %v193_v55, %v174_v28 }
  0xe6   :  { %v155_v60 = vadd.f32 1.0, %v154_v56  ;;  %v144_v8 = vadd.f32 1.1283791, %v143_v2  ;;  %v184_v14 = vadd.f32 1.1283791, %v183_v5 }
  0xe7   :  { %v195_v61 = vadd.f32 1.0, %v194_v58 }
  0xe8   :  { %278 = vrcp.f32 %v155_v60  ;;  %v167_v9 = vand.u32 2147483648, %v155_v60  ;;  %v165_v12 = vand.u32 2147483647, %v155_v60  ;;  %vm161_vm2 = vweird.f32 %v155_v60 }
  0xe9   :  { %280 = vrcp.f32 %v195_v61  ;;  %v207_v13 = vand.u32 2147483648, %v195_v61  ;;  %v205_v16 = vand.u32 2147483647, %v195_v61  ;;  %vm201_vm4 = vweird.f32 %v195_v61 }
  0xea   :  { %v168_v18 = vor.u32 1.1754944e-38, %v167_v9  ;;  %v145_v20 = vmul.f32 %v144_v8, %v441_v23  ;;  %vm166_vm5 = vcmp.eq.f32.partialorder %v165_v12, 8.507059e+37  ;;  %v185_v28 = vmul.f32 %v184_v14, %v444_v24 }
  0xeb   :  { %v208_v26 = vor.u32 1.1754944e-38, %v207_v13  ;;  %vm206_vm7 = vcmp.eq.f32.partialorder %v205_v16, 8.507059e+37 }
  0xee   :  { %v279_v1 = vpop.eup %278 }
  0xef   :  { %v281_v3 = vpop.eup %280  ;;  %v157_v4 = vmul.f32 %v279_v1, %v155_v60  ;;  %vm162_vm0 = vweird.f32 %v279_v1 }
  0xf0   :  { %v197_v6 = vmul.f32 %v281_v3, %v195_v61  ;;  %vm202_vm1 = vweird.f32 %v281_v3  ;;  %vm163_vm3 = vmor %vm161_vm2, %vm162_vm0 }
  0xf1   :  { %v158_v7 = vsub.f32 1.0, %v157_v4  ;;  %vm203_vm6 = vmor %vm201_vm4, %vm202_vm1 }
  0xf2   :  { %v198_v10 = vsub.f32 1.0, %v197_v6 }
  0xf3   :  { %v159_v11 = vmul.f32 %v279_v1, %v158_v7 }
  0xf4   :  { %v199_v15 = vmul.f32 %v281_v3, %v198_v10 }
  0xf5   :  { %v160_v17 = vadd.f32 %v279_v1, %v159_v11 }
  0xf6   :  { %v200_v19 = vadd.f32 %v281_v3, %v199_v15 }
  0xf7   :  { %v164_v25 = vsel %vm163_vm3, %v279_v1, %v160_v17 }
  0xf8   :  { %v169_v27 = vsel %vm166_vm5, %v168_v18, %v164_v25  ;;  %v204_v29 = vsel %vm203_vm6, %v281_v3, %v200_v19 }
  0xf9   :  { %v170_v30 = vmul.f32 %v169_v27, %v145_v20  ;;  %v209_v31 = vsel %vm206_vm7, %v208_v26, %v204_v29 }
  0xfa   :  { %v210_v33 = vmul.f32 %v209_v31, %v185_v28 }
  0xfb   :  { %v251_v35 = vclamps-f32 %v170_v30, 1.0 }
  0xfc   :  { %v252_v36 = vclamps-f32 %v210_v33, 1.0 }
  0xfd   :  { %v213_v23 = vadd.f32 1.0, %v251_v35 }
  0xfe   :  { %v214_v41 = vadd.f32 1.0, %v252_v36 }
  0xff   :  { %v215_v42 = vmul.f32 %v213_v23, %v129_v38 }
 0x100   :  { %v216_v43 = vmul.f32 %v214_v41, %v130_v40 }
 0x101   :  { %v225_v24 = vmul.f32 5.0, %v215_v42 }
 0x102   :  { %v226_v44 = vmul.f32 5.0, %v216_v43 }
 0x103   :  { %v227_v45 = vsel %vm221_vm8, %v225_v24, 0.0 }
 0x104   :  { %v228_v21 = vsel %vm224_vm9, %v226_v44, 0.0  ;;  %229 = vst [vmem:[#allocation9] sm:$0xff] %v227_v45 }
 0x105   :  { %230 = vst [vmem:[#allocation9 + $0x8] sm:$0xff] %v228_v21 }
 0x106   :  { %243 = dma.vmem_to_hbm [thread:$0]  %s236_s5, 256, %s238_s8, [#allocation5], %s385_s23, %s385_s23, %s386_s24  }
 0x107   :  { %382 = dma.done.wait [#allocation5], 256  }
 0x108   :  { %383 = vsyncadd [#allocation5], 4294967040 }
 0x109   :  { %248 = vsyncpa [#allocation4], 1 }
 0x10a   :  { %249 = vsyncpa [#allocation7], 1 }
 0x10b   :  { %250 = vsyncpa [#allocation5], 1 }

</bundles_post_ra>
